<compile_context>
chip_gen: v6e
topology: v6e:2x2x1
jax: 0.10.0
libtpu: 0.0.40
codegen_flags: <defaults>
</compile_context>

<pallas_src>
import functools

import jax
import jax.numpy as jnp
from jax.experimental import pallas as pl
from jax.experimental.pallas import tpu as pltpu


def _round_up(x, m):
    return ((x + m - 1) // m) * m


def _supcon_row_kernel(contrast_t_ref, anchor_ref, lab_col_ref, par_col_ref,
                       sum_pos_ref, lab_row_ref, par_row_ref, out_ref, *,
                       temperature, base_temperature, tm, n_valid):
    inv_t = jnp.float32(1.0 / temperature)

    # anchor tile, pre-scaled by 1/temperature (N*D multiplies instead of N^2)
    a = anchor_ref[...] * inv_t                                   # (TM, D)
    c_t = contrast_t_ref[...]                                     # (D, N) resident, MXU-native (K, N)

    # anchor_dot_contrast: plain (M,K) x (K,N) — no transposes inserted
    logits_raw = jax.lax.dot_general(
        a, c_t, dimension_numbers=(((1,), (0,)), ((), ())),
        preferred_element_type=jnp.float32)                       # (TM, N)
    n_pad = logits_raw.shape[1]

    # global row/col indices: self-exclusion + padded-column exclusion (no label sentinel)
    row_start = pl.program_id(0) * tm
    row_ids = row_start + jax.lax.broadcasted_iota(jnp.int32, (tm, 1), 0)
    col_ids = jax.lax.broadcasted_iota(jnp.int32, (1, n_pad), 1)
    not_self = row_ids != col_ids                                 # (TM, N) bool
    col_valid = col_ids < n_valid                                 # (1, N) bool

    # stabilization constant = max over REAL columns (matches torch max over dim=1,
    # robust against padded columns regardless of their dot values)
    row_max = jnp.max(jnp.where(col_valid, logits_raw, -jnp.inf),
                      axis=1, keepdims=True)                      # (TM, 1)
    logits = logits_raw - row_max                                 # <= 0 on real columns

    lab_r = lab_col_ref[...]                                      # (TM, 1) int32
    par_r = par_col_ref[...]                                      # (TM, 1) int32
    lab_c = lab_row_ref[...]                                      # (1, N) int32
    par_c = par_row_ref[...]                                      # (1, N) int32

    keep = jnp.logical_and(not_self, col_valid)
    den_keep = jnp.logical_and(par_r == par_c, keep)              # same-parent, non-self
    pos_keep = jnp.logical_and(lab_r == lab_c, keep)              # same-label, non-self

    # masks fused directly into the reductions — no (TM,N) f32 mask temporaries
    z = jnp.sum(jnp.where(den_keep, jnp.exp(logits), 0.0),
                axis=1, keepdims=True)                            # (TM, 1)
    sum_pos_logits = jnp.sum(jnp.where(pos_keep, logits, 0.0),
                             axis=1, keepdims=True)               # (TM, 1)
    log_z = jnp.log(z + 1e-7)

    # sum(mask * log_prob) = sum(mask * logits) - log(Z) * sum(mask); sum(mask) precomputed
    sum_pos = sum_pos_ref[...]                                    # (TM, 1) f32
    mean_log_prob_pos = (sum_pos_logits - log_z * sum_pos) / (sum_pos + 1e-7)

    loss_rows = -(temperature / base_temperature) * mean_log_prob_pos
    out_ref[...] = loss_rows.astype(out_ref.dtype)


def _resident_spec(block_shape):
    """Grid-invariant block (constant index_map): request single buffering to halve VMEM."""
    try:
        return pl.BlockSpec(block_shape, lambda i: (0, 0), pipeline_mode=pl.Buffered(1))
    except (TypeError, AttributeError):
        # fallback: default (double-buffered) spec — still correct, just more VMEM
        return pl.BlockSpec(block_shape, lambda i: (0, 0))


def sup_con_loss_hierar(features, labels, *, temperature=0.07,
                        contrast_mode="all", base_temperature=0.07):
    """JAX/Pallas equivalent of SupConLossHierar.forward (labels path, contrast_mode='all')."""
    features = jnp.asarray(features, jnp.float32)
    if features.ndim < 3:
        raise ValueError("`features` needs to be [bsz, n_views, ...]")
    if features.ndim > 3:
        features = features.reshape(features.shape[0], features.shape[1], -1)
    if contrast_mode != "all":
        # TODO(synk): contrast_mode='one' path (anchor = view 0 only) not implemented.
        raise ValueError("only contrast_mode='all' supported")

    bsz, n_views, d = features.shape
    labels = jnp.asarray(labels).reshape(-1).astype(jnp.int32)
    if labels.shape[0] != bsz:
        raise ValueError("Num of labels does not match num of features")

    n = bsz * n_views
    # torch.cat(torch.unbind(features, dim=1), dim=0): view-major ordering
    contrast = jnp.transpose(features, (1, 0, 2)).reshape(n, d)   # (N, D)

    # padding: D only to a multiple of 8 (sublane), N to a multiple of 128 (lane)
    d_pad = max(8, _round_up(d, 8))
    n_pad = _round_up(n, 128)
    contrast_rm = jnp.pad(contrast, ((0, n_pad - n), (0, d_pad - d)))      # (N_pad, D_pad) anchors
    contrast_tp = jnp.pad(contrast.T, ((0, d_pad - d), (0, n_pad - n)))    # (D_pad, N_pad) RHS

    # labels / parent labels / positive counts, precomputed once in the wrapper
    labels_tiled = jnp.tile(labels, n_views)                               # (N,)
    parents_tiled = jnp.where(labels_tiled < 15, 0,
                              jnp.where(labels_tiled < 26, 1, 2)).astype(jnp.int32)
    same_count = jnp.sum(labels[None, :] == labels[:, None], axis=1).astype(jnp.float32)
    sum_pos = jnp.tile(same_count * jnp.float32(n_views) - 1.0, n_views)   # (N,) non-self positives

    lab_col = jnp.pad(labels_tiled, (0, n_pad - n)).reshape(n_pad, 1)
    par_col = jnp.pad(parents_tiled, (0, n_pad - n)).reshape(n_pad, 1)
    sum_pos_col = jnp.pad(sum_pos, (0, n_pad - n)).reshape(n_pad, 1)
    lab_row = jnp.pad(labels_tiled, (0, n_pad - n)).reshape(1, n_pad)
    par_row = jnp.pad(parents_tiled, (0, n_pad - n)).reshape(1, n_pad)

    # generation-aware VMEM budget (~0.75x capacity: ~48 MiB v7x, ~96 MiB v5e/v6e)
    try:
        vmem_cap = int(pltpu.get_tpu_info().vmem_capacity_bytes)
    except Exception:
        vmem_cap = 64 << 20   # conservative fallback (v7x per-TC VMEM)
    budget = (vmem_cap * 3) // 4

    lane = 128
    d_lane = max(d_pad, lane)

    def _vmem_est(t):
        return (1 * d_pad * n_pad * 4          # resident (D, N) contrast, single-buffered
                + 2 * t * d_lane * 4           # (TM, D) anchor tile, double-buffered
                + 2 * 2 * 8 * n_pad * 4        # resident (1, N) label/parent rows
                + 3 * 2 * t * lane * 4         # (TM, 1) per-row inputs, lane-padded, x2 buffers
                + 2 * t * lane * 4             # (TM, 1) output slab
                + 6 * t * n_pad * 4)           # (TM, N) f32 temporaries headroom

    tm = 128                                   # n_pad is always a multiple of 128
    if n_pad % 256 == 0 and _vmem_est(256) <= budget:
        tm = 256
    # TODO(synk): if the resident D*N block alone exceeds the budget (huge N on v7x),
    # fall back to a 2-D grid with an online log-sum-exp over contrast-column tiles.
    vmem_limit = int(min(budget, max(2 * _vmem_est(tm), 32 << 20)))

    grid = (n_pad // tm,)
    kernel = functools.partial(_supcon_row_kernel,
                               temperature=float(temperature),
                               base_temperature=float(base_temperature),
                               tm=tm, n_valid=n)

    out = pl.pallas_call(
        kernel,
        out_shape=jax.ShapeDtypeStruct((n_pad, 1), jnp.float32),
        grid=grid,
        in_specs=[
            _resident_spec((d_pad, n_pad)),                       # resident transposed contrast
            pl.BlockSpec((tm, d_pad), lambda i: (i, 0)),          # anchor row tile (unpadded-D)
            pl.BlockSpec((tm, 1), lambda i: (i, 0)),              # anchor-side labels
            pl.BlockSpec((tm, 1), lambda i: (i, 0)),              # anchor-side parent labels
            pl.BlockSpec((tm, 1), lambda i: (i, 0)),              # per-row positive counts
            _resident_spec((1, n_pad)),                           # contrast-side labels
            _resident_spec((1, n_pad)),                           # contrast-side parent labels
        ],
        out_specs=pl.BlockSpec((tm, 1), lambda i: (i, 0)),
        compiler_params=pltpu.CompilerParams(
            dimension_semantics=("parallel",),
            vmem_limit_bytes=vmem_limit),
    )(contrast_tp, contrast_rm, lab_col, par_col, sum_pos_col, lab_row, par_row)

    # loss.view(anchor_count, bsz).mean() == mean over the N real rows
    return jnp.mean(out[:n, 0])


def _reference_jax(features, labels, temperature=0.07, base_temperature=0.07):
    """Pure-JAX port of the PyTorch forward, for validation."""
    bsz, n_views, d = features.shape
    labels = labels.reshape(-1, 1)
    parent = jnp.where(labels < 15, 0, jnp.where(labels < 26, 1, 2)).astype(labels.dtype)
    mask_same_parent = (parent == parent.T).astype(jnp.float32)
    mask = (labels == labels.T).astype(jnp.float32)
    contrast = jnp.concatenate([features[:, v] for v in range(n_views)], axis=0)
    n = bsz * n_views
    adc = (contrast @ contrast.T) / temperature
    logits = adc - jnp.max(adc, axis=1, keepdims=True)
    mask = jnp.tile(mask, (n_views, n_views))
    mask_same_parent = jnp.tile(mask_same_parent, (n_views, n_views))
    logits_mask = 1.0 - jnp.eye(n, dtype=jnp.float32)
    mask = mask * logits_mask
    logits_mask = logits_mask * mask_same_parent
    exp_logits = jnp.exp(logits) * logits_mask
    log_prob = logits - jnp.log(exp_logits.sum(1, keepdims=True) + 1e-7)
    mean_log_prob_pos = (mask * log_prob).sum(1) / (mask.sum(1) + 1e-7)
    loss = -(temperature / base_temperature) * mean_log_prob_pos
    return loss.reshape(n_views, bsz).mean()


if __name__ == "__main__":
    key = jax.random.PRNGKey(0)
    k_feat, k_lab = jax.random.split(key)

    bsz, n_views, feat_dim = 8, 2, 32
    features = jax.random.normal(k_feat, (bsz, n_views, feat_dim), dtype=jnp.float32)
    # labels span all three parent buckets (<15, 15..25, >=26)
    labels = jax.random.randint(k_lab, (bsz,), 0, 40, dtype=jnp.int32)

    loss = jax.block_until_ready(sup_con_loss_hierar(features, labels))
    ref = jax.block_until_ready(_reference_jax(features, labels))
    assert jnp.allclose(loss, ref, atol=1e-4, rtol=1e-4), (loss, ref)

    print("KERNEL_OK")
</pallas_src>

<mosaic_0001>
module attributes {stable_mosaic.version = 11 : i64} {
  func.func @_supcon_row_kernel(%arg0: i32, %arg1: memref<32x128xf32, #tpu.memory_space<vmem>>, %arg2: memref<128x32xf32, #tpu.memory_space<vmem>>, %arg3: memref<128x1xi32, #tpu.memory_space<vmem>>, %arg4: memref<128x1xi32, #tpu.memory_space<vmem>>, %arg5: memref<128x1xf32, #tpu.memory_space<vmem>>, %arg6: memref<1x128xi32, #tpu.memory_space<vmem>>, %arg7: memref<1x128xi32, #tpu.memory_space<vmem>>, %arg8: memref<128x1xf32, #tpu.memory_space<vmem>>) attributes {dimension_semantics = [#tpu.dimension_semantics<parallel>], iteration_bounds = array<i64: 1>, scalar_prefetch = 0 : i64, scratch_operands = 0 : i64, tpu.core_type = #tpu.core_type<tc>, window_params = [{pipeline_mode = #tpu.pipeline_mode<synchronous>, transform_indices = @transform_0, window_bounds = array<i64: 32, 128>}, {transform_indices = @transform_1, window_bounds = array<i64: 128, 32>}, {transform_indices = @transform_2, window_bounds = array<i64: 128, 1>}, {transform_indices = @transform_3, window_bounds = array<i64: 128, 1>}, {transform_indices = @transform_4, window_bounds = array<i64: 128, 1>}, {pipeline_mode = #tpu.pipeline_mode<synchronous>, transform_indices = @transform_5, window_bounds = array<i64: 1, 128>}, {pipeline_mode = #tpu.pipeline_mode<synchronous>, transform_indices = @transform_6, window_bounds = array<i64: 1, 128>}, {transform_indices = @transform_7, window_bounds = array<i64: 128, 1>}]} {
    %c0 = arith.constant 0 : index
    %c0_0 = arith.constant 0 : index
    %0 = vector.load %arg2[%c0, %c0_0] : memref<128x32xf32, #tpu.memory_space<vmem>>, vector<128x32xf32>
    %cst = arith.constant 14.2857141 : f32
    %1 = vector.broadcast %cst : f32 to vector<128x32xf32>
    %2 = arith.mulf %0, %1 : vector<128x32xf32>
    %c0_1 = arith.constant 0 : index
    %c0_2 = arith.constant 0 : index
    %3 = vector.load %arg1[%c0_1, %c0_2] : memref<32x128xf32, #tpu.memory_space<vmem>>, vector<32x128xf32>
    %cst_3 = arith.constant dense<0.000000e+00> : vector<128x128xf32>
    %4 = tpu.matmul %2, %3, %cst_3 {dimension_numbers = #tpu.dot_dimension_numbers<[1], [0], [0], [1], [0, 0, 1, 1], [], []>} : vector<128x32xf32>, vector<32x128xf32>, vector<128x128xf32> -> vector<128x128xf32>
    %c128_i32 = arith.constant 128 : i32
    %5 = arith.muli %arg0, %c128_i32 : i32
    %6 = tpu.iota {dimensions = array<i32: 0>} : vector<128x1xi32>
    %7 = vector.broadcast %5 : i32 to vector<128x1xi32>
    %8 = arith.addi %7, %6 : vector<128x1xi32>
    %9 = tpu.iota {dimensions = array<i32: 1>} : vector<1x128xi32>
    %10 = vector.broadcast %8 : vector<128x1xi32> to vector<128x128xi32>
    %11 = vector.broadcast %9 : vector<1x128xi32> to vector<128x128xi32>
    %12 = arith.cmpi ne, %10, %11 : vector<128x128xi32>
    %c16_i32 = arith.constant 16 : i32
    %13 = vector.broadcast %c16_i32 : i32 to vector<1x128xi32>
    %14 = arith.cmpi slt, %9, %13 : vector<1x128xi32>
    %cst_4 = arith.constant 0xFF800000 : f32
    %15 = vector.shape_cast %14 : vector<1x128xi1> to vector<1x128xi1>
    %16 = vector.broadcast %15 : vector<1x128xi1> to vector<128x128xi1>
    %17 = vector.broadcast %cst_4 : f32 to vector<128x128xf32>
    %18 = arith.select %16, %4, %17 : vector<128x128xi1>, vector<128x128xf32>
    %cst_5 = arith.constant dense<0xFF800000> : vector<128xf32>
    %19 = vector.multi_reduction <maximumf>, %18, %cst_5 [1] : vector<128x128xf32> to vector<128xf32>
    %20 = vector.shape_cast %19 : vector<128xf32> to vector<128x1xf32>
    %21 = vector.broadcast %20 : vector<128x1xf32> to vector<128x128xf32>
    %22 = arith.subf %4, %21 : vector<128x128xf32>
    %c0_6 = arith.constant 0 : index
    %c0_7 = arith.constant 0 : index
    %23 = vector.load %arg3[%c0_6, %c0_7] : memref<128x1xi32, #tpu.memory_space<vmem>>, vector<128x1xi32>
    %c0_8 = arith.constant 0 : index
    %c0_9 = arith.constant 0 : index
    %24 = vector.load %arg4[%c0_8, %c0_9] : memref<128x1xi32, #tpu.memory_space<vmem>>, vector<128x1xi32>
    %c0_10 = arith.constant 0 : index
    %c0_11 = arith.constant 0 : index
    %25 = vector.load %arg6[%c0_10, %c0_11] : memref<1x128xi32, #tpu.memory_space<vmem>>, vector<1x128xi32>
    %c0_12 = arith.constant 0 : index
    %c0_13 = arith.constant 0 : index
    %26 = vector.load %arg7[%c0_12, %c0_13] : memref<1x128xi32, #tpu.memory_space<vmem>>, vector<1x128xi32>
    %27 = vector.broadcast %14 : vector<1x128xi1> to vector<128x128xi1>
    %28 = arith.andi %12, %27 : vector<128x128xi1>
    %29 = vector.broadcast %24 : vector<128x1xi32> to vector<128x128xi32>
    %30 = vector.broadcast %26 : vector<1x128xi32> to vector<128x128xi32>
    %31 = arith.cmpi eq, %29, %30 : vector<128x128xi32>
    %32 = arith.andi %31, %28 : vector<128x128xi1>
    %33 = vector.broadcast %23 : vector<128x1xi32> to vector<128x128xi32>
    %34 = vector.broadcast %25 : vector<1x128xi32> to vector<128x128xi32>
    %35 = arith.cmpi eq, %33, %34 : vector<128x128xi32>
    %36 = arith.andi %35, %28 : vector<128x128xi1>
    %37 = math.exp %22 : vector<128x128xf32>
    %cst_14 = arith.constant 0.000000e+00 : f32
    %38 = vector.broadcast %cst_14 : f32 to vector<128x128xf32>
    %39 = arith.select %32, %37, %38 : vector<128x128xi1>, vector<128x128xf32>
    %cst_15 = arith.constant dense<0.000000e+00> : vector<128xf32>
    %40 = vector.multi_reduction <add>, %39, %cst_15 [1] : vector<128x128xf32> to vector<128xf32>
    %41 = vector.shape_cast %40 : vector<128xf32> to vector<128x1xf32>
    %cst_16 = arith.constant 0.000000e+00 : f32
    %42 = vector.broadcast %cst_16 : f32 to vector<128x128xf32>
    %43 = arith.select %36, %22, %42 : vector<128x128xi1>, vector<128x128xf32>
    %cst_17 = arith.constant dense<0.000000e+00> : vector<128xf32>
    %44 = vector.multi_reduction <add>, %43, %cst_17 [1] : vector<128x128xf32> to vector<128xf32>
    %45 = vector.shape_cast %44 : vector<128xf32> to vector<128x1xf32>
    %cst_18 = arith.constant 1.000000e-07 : f32
    %46 = vector.broadcast %cst_18 : f32 to vector<128x1xf32>
    %47 = arith.addf %41, %46 : vector<128x1xf32>
    %48 = math.log %47 : vector<128x1xf32>
    %c0_19 = arith.constant 0 : index
    %c0_20 = arith.constant 0 : index
    %49 = vector.load %arg5[%c0_19, %c0_20] : memref<128x1xf32, #tpu.memory_space<vmem>>, vector<128x1xf32>
    %50 = arith.mulf %48, %49 : vector<128x1xf32>
    %51 = arith.subf %45, %50 : vector<128x1xf32>
    %cst_21 = arith.constant 1.000000e-07 : f32
    %52 = vector.broadcast %cst_21 : f32 to vector<128x1xf32>
    %53 = arith.addf %49, %52 : vector<128x1xf32>
    %54 = arith.divf %51, %53 : vector<128x1xf32>
    %cst_22 = arith.constant -1.000000e+00 : f32
    %55 = vector.broadcast %cst_22 : f32 to vector<128x1xf32>
    %56 = arith.mulf %55, %54 : vector<128x1xf32>
    %c0_23 = arith.constant 0 : index
    %c0_24 = arith.constant 0 : index
    %57 = vector.load %arg8[%c0_23, %c0_24] : memref<128x1xf32, #tpu.memory_space<vmem>>, vector<128x1xf32>
    tpu.vector_store %arg8[%c0_23, %c0_24], %56 {strides = array<i32>} : memref<128x1xf32, #tpu.memory_space<vmem>>, vector<128x1xf32>,
    return
  }
  func.func @transform_0(%arg0: i32) -> (i32, i32) {
    %c0_i32 = arith.constant 0 : i32
    %c0_i32_0 = arith.constant 0 : i32
    %c0_i32_1 = arith.constant 0 : i32
    return %c0_i32, %c0_i32_0 : i32, i32
  }
  func.func @transform_1(%arg0: i32) -> (i32, i32) {
    %c0_i32 = arith.constant 0 : i32
    %c0_i32_0 = arith.constant 0 : i32
    return %arg0, %c0_i32 : i32, i32
  }
  func.func @transform_2(%arg0: i32) -> (i32, i32) {
    %c0_i32 = arith.constant 0 : i32
    %c0_i32_0 = arith.constant 0 : i32
    return %arg0, %c0_i32 : i32, i32
  }
  func.func @transform_3(%arg0: i32) -> (i32, i32) {
    %c0_i32 = arith.constant 0 : i32
    %c0_i32_0 = arith.constant 0 : i32
    return %arg0, %c0_i32 : i32, i32
  }
  func.func @transform_4(%arg0: i32) -> (i32, i32) {
    %c0_i32 = arith.constant 0 : i32
    %c0_i32_0 = arith.constant 0 : i32
    return %arg0, %c0_i32 : i32, i32
  }
  func.func @transform_5(%arg0: i32) -> (i32, i32) {
    %c0_i32 = arith.constant 0 : i32
    %c0_i32_0 = arith.constant 0 : i32
    %c0_i32_1 = arith.constant 0 : i32
    return %c0_i32, %c0_i32_0 : i32, i32
  }
  func.func @transform_6(%arg0: i32) -> (i32, i32) {
    %c0_i32 = arith.constant 0 : i32
    %c0_i32_0 = arith.constant 0 : i32
    %c0_i32_1 = arith.constant 0 : i32
    return %c0_i32, %c0_i32_0 : i32, i32
  }
  func.func @transform_7(%arg0: i32) -> (i32, i32) {
    %c0_i32 = arith.constant 0 : i32
    %c0_i32_0 = arith.constant 0 : i32
    return %arg0, %c0_i32 : i32, i32
  }
}

</mosaic_0001>

<bundles_post_ra>
// kernel: tpu_custom_call.1
= control target key start
LH: loop header
LB: loop body
LE: loop exit
PB: predicated region body
PF: predicated region fallthrough
CT: control target
= control target key end

     0   :  { %v1080_v2 = vmov 0   ;;  %vm62_vm0 = vcmask 261120   ;;  %s2061_s0 = inlined_call_operand.vmem [shape: f32[32,128], index: 0, kind: input, shape index: {}]   ;;  %s2062_s1 = inlined_call_operand.vmem [shape: f32[128,32], index: 1, kind: input, shape index: {}]   ;;  %s2063_s3 = inlined_call_operand.vmem [shape: s32[128,1], index: 3, kind: input, shape index: {}]   ;;  %s2064_s2 = inlined_call_operand.vmem [shape: s32[128,1], index: 2, kind: input, shape index: {}]   ;;  %s2065_s6 = inlined_call_operand.vmem [shape: s32[1,128], index: 6, kind: input, shape index: {}]   ;;  %s2066_s5 = inlined_call_operand.vmem [shape: s32[1,128], index: 5, kind: input, shape index: {}]   ;;  %s2067_s4 = inlined_call_operand.vmem [shape: f32[128,1], index: 4, kind: input, shape index: {}]   ;;  %s2068_s7 = inlined_call_operand.vmem [shape: f32[128,1], index: 7, kind: output, shape index: {}]  }
   0x1   :  { %v61_v0 = vld [vmem:[%s2061_s0 + $0x18] sm:$0xff]  ;;  %v60_v1 = vld [vmem:[%s2061_s0 + $0x10] sm:$0xff]  ;;  %983 = vset.pattern.permute.xlu1 %v1080_v2  ;;  %982 = vset.pattern.permute.xlu0 %v1080_v2  ;;  %v59_v3 = vld [vmem:[%s2061_s0 + $0x8] sm:$0xff] }
   0x2   :  { %941 = vmatprep.subr.mxu0 %v61_v0  ;;  %973 = vmatprep.subr.mxu1 %v61_v0  ;;  %v26_v4 = vld [vmem:[%s2062_s1] sm:$0xff]  ;;  %v27_v6 = vld [vmem:[%s2062_s1 + $0x8] sm:$0xff]  ;;  %v28_v9 = vld [vmem:[%s2062_s1 + $0x10] sm:$0xff] }
   0x3   :  { %942 = vmatpush3.msra.mxu0 %v61_v0  ;;  %977 = vmatpush3.msra.mxu1 %v61_v0  ;;  %v34_v5 = vld [vmem:[%s2062_s1 + $0x40] sm:$0xff]  ;;  %v35_v7 = vld [vmem:[%s2062_s1 + $0x48] sm:$0xff]  ;;  %v36_v10 = vld [vmem:[%s2062_s1 + $0x50] sm:$0xff]  ;;  %v42_v11 = vmul.f32 14.285714, %v26_v4 }
   0x4   :  { %943 = vmatprep.subr.mxu0 %v60_v1  ;;  %974 = vmatprep.subr.mxu1 %v60_v1  ;;  %v58_v8 = vld [vmem:[%s2061_s0] sm:$0xff]  ;;  %v50_v12 = vmul.f32 14.285714, %v34_v5  ;;  %v43_v13 = vmul.f32 14.285714, %v27_v6  ;;  %v29_v16 = vld [vmem:[%s2062_s1 + $0x18] sm:$0xff] }
   0x5   :  { %944 = vmatpush3.msra.mxu0 %v60_v1  ;;  %978 = vmatpush3.msra.mxu1 %v60_v1  ;;  %v51_v14 = vmul.f32 14.285714, %v35_v7  ;;  %v44_v15 = vmul.f32 14.285714, %v28_v9  ;;  %v52_v17 = vmul.f32 14.285714, %v36_v10 }
   0x6   :  { %945 = vmatprep.subr.mxu0 %v59_v3  ;;  %975 = vmatprep.subr.mxu1 %v59_v3  ;;  %v37_v18 = vld [vmem:[%s2062_s1 + $0x58] sm:$0xff]  ;;  %v30_v19 = vld [vmem:[%s2062_s1 + $0x20] sm:$0xff]  ;;  %v393_v21 = vld [vmem:[%s2063_s3 + $0x8] sm:$0xff]  ;;  %v45_v22 = vmul.f32 14.285714, %v29_v16 }
   0x7   :  { %946 = vmatpush3.msra.mxu0 %v59_v3  ;;  %979 = vmatpush3.msra.mxu1 %v59_v3  ;;  %v38_v20 = vld [vmem:[%s2062_s1 + $0x60] sm:$0xff]  ;;  %v53_v23 = vmul.f32 14.285714, %v37_v18  ;;  %v46_v24 = vmul.f32 14.285714, %v30_v19  ;;  %v31_v25 = vld [vmem:[%s2062_s1 + $0x28] sm:$0xff]  ;;  %v257_v3 = vlaneseq }
   0x8   :  { %947 = vmatprep.subr.mxu0 %v58_v8  ;;  %976 = vmatprep.subr.mxu1 %v58_v8  ;;  %v54_v26 = vmul.f32 14.285714, %v38_v20  ;;  %v39_v27 = vld [vmem:[%s2062_s1 + $0x68] sm:$0xff]  ;;  %v32_v28 = vld [vmem:[%s2062_s1 + $0x30] sm:$0xff]  ;;  %v392_v31 = vld [vmem:[%s2063_s3] sm:$0xff] }
   0x9   :  { %948 = vmatpush3.msra.mxu0 %v58_v8  ;;  %980 = vmatpush3.msra.mxu1 %v58_v8  ;;  %v40_v29 = vld [vmem:[%s2062_s1 + $0x70] sm:$0xff]  ;;  %v47_v32 = vmul.f32 14.285714, %v31_v25  ;;  %v55_v33 = vmul.f32 14.285714, %v39_v27  ;;  %v33_v35 = vld [vmem:[%s2062_s1 + $0x38] sm:$0xff] }
   0xa   :  { %949 = vmatprep.mubr.msk.f32.mxu0 %vm62_vm0, %v42_v11  ;;  %961 = vmatprep.mubr.msk.f32.mxu1 %vm62_vm0, %v50_v12  ;;  %v394_v30 = vld [vmem:[%s2063_s3 + $0x10] sm:$0xff]  ;;  %v48_v34 = vmul.f32 14.285714, %v32_v28  ;;  %v56_v36 = vmul.f32 14.285714, %v40_v29  ;;  %v41_v37 = vld [vmem:[%s2062_s1 + $0x78] sm:$0xff] }
   0xb   :  { %950 = vmatmul.mubr.msk.f32.vlgmr.msra.gmra.mxu0 %vm62_vm0, %v43_v13  ;;  %962 = vmatmul.mubr.msk.f32.vlgmr.msra.gmra.mxu1 %vm62_vm0, %v51_v14  ;;  %v395_v38 = vld [vmem:[%s2063_s3 + $0x18] sm:$0xff]  ;;  %v401_v39 = vld [vmem:[%s2063_s3 + $0x48] sm:$0xff]  ;;  %v49_v40 = vmul.f32 14.285714, %v33_v35  ;;  %v57_v41 = vmul.f32 14.285714, %v41_v37 }
   0xc   :  { %952 = vmatprep.mubr.msk.f32.mxu0 %vm62_vm0, %v44_v15  ;;  %964 = vmatprep.mubr.msk.f32.mxu1 %vm62_vm0, %v52_v17  ;;  %v396_v42 = vld [vmem:[%s2063_s3 + $0x20] sm:$0xff]  ;;  %v403_v43 = vld [vmem:[%s2063_s3 + $0x58] sm:$0xff]  ;;  %v397_v44 = vld [vmem:[%s2063_s3 + $0x28] sm:$0xff]  ;;  %v258_v4 = vshrl.u32 %v257_v3, 7  ;;  %v1287_v5 = vand.u32 127, %v257_v3  ;;  %v2085_v25 = vmov 0 }
   0xd   :  { %430 = vperm.xlu1 %983, %v393_v21   ;;  %427 = vperm.xlu0 %982, %v392_v31   ;;  %v405_v45 = vld [vmem:[%s2063_s3 + $0x68] sm:$0xff]  ;;  %v398_v46 = vld [vmem:[%s2063_s3 + $0x30] sm:$0xff]  ;;  %v407_v47 = vld [vmem:[%s2063_s3 + $0x78] sm:$0xff]  ;;  %v2087_v28 = vmov 0  ;;  %v2093_v31 = vmov 0  ;;  %v2101_v37 = vmov 0 }
   0xe   :  { %v399_v48 = vld [vmem:[%s2063_s3 + $0x38] sm:$0xff]  ;;  %v377_v49 = vld [vmem:[%s2064_s2 + $0x8] sm:$0xff]  ;;  %v400_v50 = vld [vmem:[%s2063_s3 + $0x40] sm:$0xff]  ;;  %v259_v6 = vadd.s32 8, %v258_v4  ;;  %v261_v7 = vadd.s32 24, %v258_v4  ;;  %v260_v8 = vadd.s32 16, %v258_v4  ;;  %vm293_vm3 = vcmp.ne.s32.totalorder %v258_v4, %v1287_v5 }
   0xf   :  { %953 = vmatmul.mubr.msk.f32.gmra.mxu0 %vm62_vm0, %v45_v22  ;;  %965 = vmatmul.mubr.msk.f32.gmra.mxu1 %vm62_vm0, %v53_v23  ;;  %v379_v51 = vld [vmem:[%s2064_s2 + $0x18] sm:$0xff]  ;;  %v402_v52 = vld [vmem:[%s2063_s3 + $0x50] sm:$0xff]  ;;  %v381_v53 = vld [vmem:[%s2064_s2 + $0x28] sm:$0xff]  ;;  %v263_v9 = vadd.s32 40, %v258_v4  ;;  %v262_v10 = vadd.s32 32, %v258_v4  ;;  %v1289_v11 = vadd.s32 64, %v258_v4 }
  0x10   :  { %955 = vmatprep.mubr.msk.f32.mxu0 %vm62_vm0, %v46_v24  ;;  %967 = vmatprep.mubr.msk.f32.mxu1 %vm62_vm0, %v54_v26  ;;  %v404_v54 = vld [vmem:[%s2063_s3 + $0x60] sm:$0xff]  ;;  %v383_v55 = vld [vmem:[%s2064_s2 + $0x38] sm:$0xff]  ;;  %v406_v56 = vld [vmem:[%s2063_s3 + $0x70] sm:$0xff]  ;;  %v1291_v12 = vadd.s32 80, %v258_v4  ;;  %v1293_v13 = vadd.s32 96, %v258_v4  ;;  %vm294_vm1 = vcmp.ne.s32.totalorder %v259_v6, %v1287_v5  ;;  %vm296_vm2 = vcmp.ne.s32.totalorder %v261_v7, %v1287_v5 }
  0x11   :  { %433 = vperm.xlu1 %983, %v394_v30   ;;  %454 = vperm.xlu0 %982, %v401_v39   ;;  %v385_v57 = vld [vmem:[%s2064_s2 + $0x48] sm:$0xff]  ;;  %v376_v58 = vld [vmem:[%s2064_s2] sm:$0xff]  ;;  %v387_v59 = vld [vmem:[%s2064_s2 + $0x58] sm:$0xff]  ;;  %vm295_vm4 = vcmp.ne.s32.totalorder %v260_v8, %v1287_v5  ;;  %vm297_vm6 = vcmp.ne.s32.totalorder %v262_v10, %v1287_v5  ;;  %v1307_v14 = vadd.s32 56, %v258_v4  ;;  %v264_v15 = vadd.s32 48, %v258_v4 }
  0x12   :  { %v378_v60 = vld [vmem:[%s2064_s2 + $0x10] sm:$0xff]  ;;  %v389_v61 = vld [vmem:[%s2064_s2 + $0x68] sm:$0xff]  ;;  %v380_v62 = vld [vmem:[%s2064_s2 + $0x20] sm:$0xff]  ;;  %v1309_v16 = vadd.s32 112, %v258_v4  ;;  %v267_v17 = vadd.s32 72, %v258_v4  ;;  %v269_v18 = vadd.s32 88, %v258_v4 }
  0x13   :  { %956 = vmatmul.mubr.msk.f32.gmra.mxu0 %vm62_vm0, %v47_v32  ;;  %968 = vmatmul.mubr.msk.f32.gmra.mxu1 %vm62_vm0, %v55_v33  ;;  %v382_v63 = vld [vmem:[%s2064_s2 + $0x30] sm:$0xff]  ;;  %v384_v0 = vld [vmem:[%s2064_s2 + $0x40] sm:$0xff]  ;;  %v271_v19 = vadd.s32 104, %v258_v4  ;;  %v273_v20 = vadd.s32 120, %v258_v4  ;;  %vm2076_vm9 = vcmp.lt.s32.totalorder %v1287_v5, 16  ;;  %v2083_v24 = vmov 0 }
  0x14   :  { %958 = vmatprep.mubr.msk.f32.mxu0 %vm62_vm0, %v48_v34  ;;  %970 = vmatprep.mubr.msk.f32.mxu1 %vm62_vm0, %v56_v36  ;;  %v386_v1 = vld [vmem:[%s2064_s2 + $0x50] sm:$0xff]  ;;  %v388_v2 = vld [vmem:[%s2064_s2 + $0x60] sm:$0xff]  ;;  %vm302_vm13 = vcmp.ne.s32.totalorder %v267_v17, %v1287_v5  ;;  %vm304_vm14 = vcmp.ne.s32.totalorder %v269_v18, %v1287_v5  ;;  %vm1330_vm12 = vmand %vm294_vm1, %vm2076_vm9  ;;  %v2091_v30 = vmov 0  ;;  %v2095_v34 = vmov 0 }
  0x15   :  { %436 = vperm.xlu1 %983, %v395_v38   ;;  %460 = vperm.xlu0 %982, %v403_v43   ;;  %v1323_v21 = vld [vmem:[%s2065_s6] ss:$0 sm:$0xff]  ;;  %vm1345_vm10 = vmand %vm293_vm3, %vm2076_vm9  ;;  %v2099_v36 = vmov 0  ;;  %v2110_v43 = vmov 0  ;;  %v2146_v3 = vmov 0  ;;  %v2149_v8 = vmov 0 }
  0x16   :  { %v2086_v25 = vsel %vm1345_vm10, 4294967295, %v2085_v25  ;;  %vm1353_vm1 = vmand %vm295_vm4, %vm2076_vm9  ;;  %v1557_v6 = vld [vmem:[%s2066_s5] ss:$0 sm:$0xff]  ;;  %v2166_v29 = vmov 0 }
  0x17   :  { %959 = vmatmul.mubr.msk.f32.gmra.mxu0 %vm62_vm0, %v49_v40  ;;  %971 = vmatmul.mubr.msk.f32.gmra.mxu1 %vm62_vm0, %v57_v41  ;;  %v2088_v28 = vsel %vm1353_vm1, 4294967295, %v2087_v28  ;;  %vm1363_vm3 = vmand %vm302_vm13, %vm2076_vm9  ;;  %v2103_v40 = vmov 0  ;;  %v2106_v41 = vmov 0 }
  0x18   :  { %vm1383_vm13 = vmand %vm296_vm2, %vm2076_vm9 }
  0x19   :  { %439 = vperm.xlu1 %983, %v396_v42   ;;  %466 = vperm.xlu0 %982, %v405_v45   ;;  %v2096_v34 = vsel %vm1383_vm13, 4294967295, %v2095_v34  ;;  %v2108_v42 = vmov 0 }
  0x1d   :  { %442 = vperm.xlu1 %983, %v397_v44   ;;  %472 = vperm.xlu0 %982, %v407_v47  }
  0x21   :  { %445 = vperm.xlu1 %983, %v398_v46   ;;  %514 = vperm.xlu0 %982, %v377_v49   ;;  %v2113_v46 = vmov 0  ;;  %v2120_v49 = vmov 0 }
  0x25   :  { %448 = vperm.xlu1 %983, %v399_v48   ;;  %520 = vperm.xlu0 %982, %v379_v51   ;;  %v2118_v48 = vmov 0 }
  0x29   :  { %451 = vperm.xlu1 %983, %v400_v50   ;;  %526 = vperm.xlu0 %982, %v381_v53   ;;  %v2126_v53 = vmov 0 }
  0x2d   :  { %457 = vperm.xlu1 %983, %v402_v52   ;;  %532 = vperm.xlu0 %982, %v383_v55   ;;  %v2123_v52 = vmov 0 }
  0x31   :  { %463 = vperm.xlu1 %983, %v404_v54   ;;  %538 = vperm.xlu0 %982, %v385_v57   ;;  %v2128_v54 = vmov 0 }
  0x35   :  { %469 = vperm.xlu1 %983, %v406_v56   ;;  %544 = vperm.xlu0 %982, %v387_v59  }
  0x39   :  { %511 = vperm.xlu1 %983, %v376_v58   ;;  %550 = vperm.xlu0 %982, %v389_v61   ;;  %v2133_v58 = vmov 0 }
  0x3d   :  { %517 = vperm.xlu1 %983, %v378_v60  }
  0x41   :  { %523 = vperm.xlu1 %983, %v380_v62   ;;  %v2138_v62 = vmov 0 }
  0x45   :  { %529 = vperm.xlu1 %983, %v382_v63  }
  0x49   :  { %535 = vperm.xlu1 %983, %v384_v0  }
  0x4d   :  { %541 = vperm.xlu1 %983, %v386_v1  }
  0x51   :  { %547 = vperm.xlu1 %983, %v388_v2   ;;  %v2144_v2 = vmov 0 }
  0x88   :  { %v431_v23 = vpop.permute.xlu1 %430  ;;  %v428_v27 = vpop.permute.xlu0 %427 }
  0x89   :  { %vm479_vm8 = vcmp.eq.s32.totalorder %v431_v23, %v1323_v21  ;;  %vm478_vm0 = vcmp.eq.s32.totalorder %v428_v27, %v1323_v21 }
  0x8a   :  { %vm1337_vm7 = vmand %vm479_vm8, %vm1330_vm12 }
  0x8b   :  { %v2084_v24 = vsel %vm1337_vm7, 4294967295, %v2083_v24  ;;  %vm1369_vm11 = vmand %vm478_vm0, %vm1345_vm10 }
  0x8c   :  { %v434_v26 = vpop.permute.xlu1 %433  ;;  %v2092_v30 = vsel %vm1369_vm11, 4294967295, %v2091_v30  ;;  %v455_v33 = vpop.permute.xlu0 %454 }
  0x8d   :  { %vm480_vm8 = vcmp.eq.s32.totalorder %v434_v26, %v1323_v21  ;;  %vm487_vm15 = vcmp.eq.s32.totalorder %v455_v33, %v1323_v21 }
  0x8e   :  { %vm1375_vm4 = vmand %vm480_vm8, %vm1353_vm1  ;;  %vm2148_vm1 = vcmp.ne.s32.totalorder %v1309_v16, %v1287_v5 }
  0x8f   :  { %v2094_v31 = vsel %vm1375_vm4, 4294967295, %v2093_v31  ;;  %vm1393_vm8 = vmand %vm304_vm14, %vm2076_vm9 }
  0x90   :  { %v437_v32 = vpop.permute.xlu1 %436  ;;  %vm1399_vm5 = vmand %vm487_vm15, %vm1363_vm3  ;;  %v461_v39 = vpop.permute.xlu0 %460 }
  0x91   :  { %vm481_vm0 = vcmp.eq.s32.totalorder %v437_v32, %v1323_v21  ;;  %v2100_v36 = vsel %vm1399_vm5, 4294967295, %v2099_v36  ;;  %vm1413_vm14 = vmand %vm297_vm6, %vm2076_vm9  ;;  %vm489_vm4 = vcmp.eq.s32.totalorder %v461_v39, %v1323_v21 }
  0x92   :  { %vm1405_vm2 = vmand %vm481_vm0, %vm1383_vm13  ;;  %v2104_v40 = vsel %vm1413_vm14, 4294967295, %v2103_v40  ;;  %vm2105_vm0 = vcmp.ne.s32.totalorder %v263_v9, %v1287_v5 }
  0x93   :  { %v2102_v37 = vsel %vm1405_vm2, 4294967295, %v2101_v37  ;;  %vm1423_vm11 = vmand %vm2105_vm0, %vm2076_vm9  ;;  %vm2112_vm0 = vcmp.ne.s32.totalorder %v271_v19, %v1287_v5 }
  0x94   :  { %v440_v38 = vpop.permute.xlu1 %439  ;;  %v2107_v41 = vsel %vm1423_vm11, 4294967295, %v2106_v41  ;;  %vm1429_vm2 = vmand %vm489_vm4, %vm1393_vm8  ;;  %v467_v45 = vpop.permute.xlu0 %466 }
  0x95   :  { %vm482_vm15 = vcmp.eq.s32.totalorder %v440_v38, %v1323_v21  ;;  %v2109_v42 = vsel %vm1429_vm2, 4294967295, %v2108_v42  ;;  %vm1443_vm7 = vmand %vm2112_vm0, %vm2076_vm9  ;;  %vm491_vm2 = vcmp.eq.s32.totalorder %v467_v45, %v1323_v21 }
  0x96   :  { %vm1435_vm6 = vmand %vm482_vm15, %vm1413_vm14  ;;  %v2114_v46 = vsel %vm1443_vm7, 4294967295, %v2113_v46  ;;  %vm2115_vm15 = vcmp.ne.s32.totalorder %v264_v15, %v1287_v5 }
  0x97   :  { %v2111_v43 = vsel %vm1435_vm6, 4294967295, %v2110_v43  ;;  %vm1453_vm5 = vmand %vm2115_vm15, %vm2076_vm9  ;;  %vm2122_vm15 = vcmp.ne.s32.totalorder %v273_v20, %v1287_v5 }
  0x98   :  { %v443_v44 = vpop.permute.xlu1 %442  ;;  %vm1465_vm0 = vmand %vm491_vm2, %vm1443_vm7  ;;  %v473_v51 = vpop.permute.xlu0 %472 }
  0x99   :  { %vm483_vm4 = vcmp.eq.s32.totalorder %v443_v44, %v1323_v21  ;;  %v2121_v49 = vsel %vm1465_vm0, 4294967295, %v2120_v49  ;;  %vm1473_vm14 = vmand %vm2122_vm15, %vm2076_vm9  ;;  %vm2130_vm15 = vcmp.ne.s32.totalorder %v1307_v14, %v1287_v5 }
  0x9a   :  { %vm1459_vm6 = vmand %vm483_vm4, %vm1423_vm11  ;;  %v2124_v52 = vsel %vm1473_vm14, 4294967295, %v2123_v52 }
  0x9b   :  { %v2119_v48 = vsel %vm1459_vm6, 4294967295, %v2118_v48  ;;  %2125 = vst [vmem:[#allocation2_spill] sm:$0xff] %v2124_v52  ;;  %vm493_vm6 = vcmp.eq.s32.totalorder %v473_v51, %v1323_v21  ;;  %vm1498_vm0 = vmand %vm2130_vm15, %vm2076_vm9 }
  0x9c   :  { %v446_v50 = vpop.permute.xlu1 %445  ;;  %vm1487_vm7 = vmand %vm493_vm6, %vm1473_vm14  ;;  %v1491_v56 = vpop.permute.xlu0 %514  ;;  %vm2135_vm14 = vcmp.ne.s32.totalorder %v1289_v11, %v1287_v5 }
  0x9d   :  { %vm484_vm4 = vcmp.eq.s32.totalorder %v446_v50, %v1323_v21  ;;  %v2129_v54 = vsel %vm1487_vm7, 4294967295, %v2128_v54  ;;  %vm1516_vm15 = vmand %vm2135_vm14, %vm2076_vm9 }
  0x9e   :  { %vm1481_vm2 = vmand %vm484_vm4, %vm1453_vm5 }
  0x9f   :  { %v2127_v53 = vsel %vm1481_vm2, 4294967295, %v2126_v53  ;;  %vm2140_vm2 = vcmp.ne.s32.totalorder %v1291_v12, %v1287_v5 }
  0xa0   :  { %v449_v55 = vpop.permute.xlu1 %448  ;;  %v1509_v60 = vpop.permute.xlu0 %520  ;;  %vm1534_vm14 = vmand %vm2140_vm2, %vm2076_vm9 }
  0xa1   :  { %vm485_vm4 = vcmp.eq.s32.totalorder %v449_v55, %v1323_v21 }
  0xa2   :  { %vm1505_vm6 = vmand %vm485_vm4, %vm1498_vm0 }
  0xa3   :  { %v2134_v58 = vsel %vm1505_vm6, 4294967295, %v2133_v58 }
  0xa4   :  { %v452_v59 = vpop.permute.xlu1 %451  ;;  %v1527_v0 = vpop.permute.xlu0 %526 }
  0xa5   :  { %vm486_vm7 = vcmp.eq.s32.totalorder %v452_v59, %v1323_v21 }
  0xa6   :  { %vm1523_vm4 = vmand %vm486_vm7, %vm1516_vm15  ;;  %vm2143_vm7 = vcmp.ne.s32.totalorder %v1293_v13, %v1287_v5 }
  0xa7   :  { %v2139_v62 = vsel %vm1523_vm4, 4294967295, %v2138_v62  ;;  %vm1544_vm4 = vmand %vm2143_vm7, %vm2076_vm9 }
  0xa8   :  { %v458_v63 = vpop.permute.xlu1 %457  ;;  %v2145_v2 = vsel %vm1544_vm4, 4294967295, %v2144_v2  ;;  %v533_v7 = vpop.permute.xlu0 %532 }
  0xa9   :  { %vm488_vm6 = vcmp.eq.s32.totalorder %v458_v63, %v1323_v21  ;;  %vm569_vm7 = vcmp.eq.s32.totalorder %v533_v7, %v1557_v6 }
  0xaa   :  { %vm1550_vm11 = vmand %vm488_vm6, %vm1534_vm14 }
  0xab   :  { %v2147_v3 = vsel %vm1550_vm11, 4294967295, %v2146_v3  ;;  %vm1566_vm6 = vmand %vm2148_vm1, %vm2076_vm9 }
  0xac   :  { %v464_v4 = vpop.permute.xlu1 %463  ;;  %v2150_v8 = vsel %vm1566_vm6, 4294967295, %v2149_v8  ;;  %vm1578_vm10 = vmand %vm569_vm7, %vm1498_vm0  ;;  %v539_v12 = vpop.permute.xlu0 %538 }
  0xad   :  { %vm490_vm2 = vcmp.eq.s32.totalorder %v464_v4, %v1323_v21  ;;  %2151 = vst [vmem:[#allocation3_spill] sm:$0xff] %v2150_v8  ;;  %vm571_vm1 = vcmp.eq.s32.totalorder %v539_v12, %v1557_v6 }
  0xae   :  { %vm1572_vm11 = vmand %vm490_vm2, %vm1544_vm4  ;;  %vm2184_vm4 = vnez %v2086_v25 }
  0xaf   :  { %vm1592_vm2 = vmand %vm571_vm1, %vm1363_vm3 }
  0xb0   :  { %v470_v11 = vpop.permute.xlu1 %469  ;;  %v545_v16 = vpop.permute.xlu0 %544 }
  0xb1   :  { %vm492_vm13 = vcmp.eq.s32.totalorder %v470_v11, %v1323_v21  ;;  %vm573_vm0 = vcmp.eq.s32.totalorder %v545_v16, %v1557_v6 }
  0xb2   :  { %vm1586_vm9 = vmand %vm492_vm13, %vm1566_vm6 }
  0xb3   :  { %vm1601_vm7 = vmand %vm573_vm0, %vm1393_vm8 }
  0xb4   :  { %v1596_v15 = vpop.permute.xlu1 %511 }
  0xb8   :  { %v1605_v18 = vpop.permute.xlu1 %517 }
  0xbc   :  { %v1607_v19 = vpop.permute.xlu1 %523 }
  0xc0   :  { %v530_v20 = vpop.permute.xlu1 %529 }
  0xc1   :  { %vm568_vm3 = vcmp.eq.s32.totalorder %v530_v20, %v1557_v6 }
  0xc2   :  { %vm1612_vm13 = vmand %vm568_vm3, %vm1453_vm5  ;;  %vm2168_vm5 = vcmp.lt.s32.totalorder %v1287_v5, 16 }
  0xc3   :  { %vm2169_vm3 = vmmov %vm2168_vm5 }
  0xc4   :  { %v536_v23 = vpop.permute.xlu1 %535 }
  0xc5   :  { %vm570_vm1 = vcmp.eq.s32.totalorder %v536_v23, %v1557_v6 }
  0xc6   :  { %vm1619_vm8 = vmand %vm570_vm1, %vm1516_vm15 }
  0xc7   :  { %vm2170_vm15 = vmmov %vm2169_vm3 }
  0xc8   :  { %v542_v27 = vpop.permute.xlu1 %541  ;;  %vm2172_vm1 = vmmov %vm2169_vm3 }
  0xc9   :  { %vm572_vm0 = vcmp.eq.s32.totalorder %v542_v27, %v1557_v6 }
  0xca   :  { %vm1626_vm6 = vmand %vm572_vm0, %vm1534_vm14 }
  0xcb   :  { %v2167_v29 = vsel %vm1626_vm6, 4294967295, %v2166_v29  ;;  %v951_v32 = vpop.f32.mrf.mxu0  ;;  %v963_v33 = vpop.f32.mrf.mxu1  ;;  %vm2171_vm14 = vmmov %vm2169_vm3 }
  0xcc   :  { %v321_v35 = vsel %vm2168_vm5, %v963_v33, -inf  ;;  %v313_v38 = vsel %vm2169_vm3, %v951_v32, -inf  ;;  %vm2173_vm0 = vmmov %vm2172_vm1 }
  0xcd   :  { %346 = vmax.xlane.f32.xlu1 %v321_v35  ;;  %330 = vmax.xlane.f32.xlu0 %v313_v38  ;;  %v177_v39 = vpop.f32.mrf.mxu0  ;;  %v1634_v44 = vpop.f32.mrf.mxu1  ;;  %vm2174_vm5 = vmmov %vm2173_vm0 }
  0xce   :  { %v312_v47 = vsel %vm2170_vm15, %v177_v39, -inf  ;;  %v320_v59 = vsel %vm2173_vm0, %v1634_v44, -inf  ;;  %vm2175_vm3 = vmmov %vm2173_vm0 }
  0xcf   :  { %v954_v45 = vpop.f32.mrf.mxu0  ;;  %v1640_v51 = vpop.f32.mrf.mxu1  ;;  %vm2176_vm15 = vmmov %vm2173_vm0 }
  0xd0   :  { %v315_v50 = vsel %vm2171_vm14, %v954_v45, -inf  ;;  %v323_v55 = vsel %vm2172_vm1, %v1640_v51, -inf  ;;  %vm2177_vm14 = vmmov %vm2173_vm0 }
  0xd1   :  { %328 = vmax.xlane.f32.xlu0 %v312_v47  ;;  %334 = vmax.xlane.f32.xlu1 %v315_v50  ;;  %v1645_v57 = vpop.f32.mrf.mxu0  ;;  %v1650_v61 = vpop.f32.mrf.mxu1  ;;  %vm2178_vm1 = vmmov %vm2173_vm0 }
  0xd2   :  { %v322_v4 = vsel %vm2174_vm5, %v1650_v61, -inf  ;;  %v314_v7 = vsel %vm2175_vm3, %v1645_v57, -inf  ;;  %vm2179_vm5 = vmmov %vm2173_vm0 }
  0xd3   :  { %v1652_v63 = vpop.f32.mrf.mxu0  ;;  %v1654_v1 = vpop.f32.mrf.mxu1  ;;  %vm2180_vm3 = vmmov %vm2173_vm0 }
  0xd4   :  { %v317_v20 = vsel %vm2176_vm15, %v1652_v63, -inf  ;;  %v325_v27 = vsel %vm2178_vm1, %v1654_v1, -inf  ;;  %vm2181_vm15 = vmmov %vm2173_vm0  ;;  %vm563_vm1 = vcmp.eq.s32.totalorder %v1491_v56, %v1557_v6 }
  0xd5   :  { %344 = vmax.xlane.f32.xlu0 %v320_v59  ;;  %350 = vmax.xlane.f32.xlu1 %v323_v55  ;;  %v1662_v11 = vpop.f32.mrf.mxu0  ;;  %v1664_v12 = vpop.f32.mrf.mxu1 }
  0xd6   :  { %v316_v23 = vsel %vm2177_vm14, %v1662_v11, -inf  ;;  %v324_v35 = vsel %vm2173_vm0, %v1664_v12, -inf  ;;  %vm2182_vm14 = vmmov %vm2173_vm0  ;;  %vm565_vm0 = vcmp.eq.s32.totalorder %v1509_v60, %v1557_v6 }
  0xd7   :  { %v1666_v16 = vpop.f32.mrf.mxu0  ;;  %v1682_v47 = vpop.f32.mrf.mxu1 }
  0xd8   :  { %v319_v50 = vsel %vm2179_vm5, %v1666_v16, -inf  ;;  %vm579_vm5 = vmand %vm563_vm1, %vm1330_vm12  ;;  %vm564_vm12 = vcmp.eq.s32.totalorder %v1605_v18, %v1557_v6  ;;  %vm2185_vm1 = vnez %v2088_v28 }
  0xd9   :  { %348 = vmax.xlane.f32.xlu0 %v322_v4  ;;  %332 = vmax.xlane.f32.xlu1 %v314_v7  ;;  %v1680_v38 = vpop.f32.mrf.mxu0  ;;  %v1690_v59 = vpop.f32.mrf.mxu1  ;;  %v327_v4 = vsel %vm2181_vm15, %v1682_v47, -inf  ;;  %vm2183_vm15 = vnez %v2096_v34 }
  0xda   :  { %v318_v55 = vsel %vm2180_vm3, %v1680_v38, -inf  ;;  %v326_v7 = vsel %vm2182_vm14, %v1690_v59, -inf  ;;  %vm562_vm3 = vcmp.eq.s32.totalorder %v1596_v15, %v1557_v6  ;;  %vm581_vm14 = vmand %vm565_vm0, %vm2183_vm15  ;;  %vm2187_vm15 = vnez %v2104_v40 }
  0xdb   :  { %vm578_vm6 = vmand %vm562_vm3, %vm2184_vm4  ;;  %vm566_vm4 = vcmp.eq.s32.totalorder %v1607_v19, %v1557_v6 }
  0xdc   :  { %vm580_vm0 = vmand %vm564_vm12, %vm2185_vm1  ;;  %vm2188_vm12 = vnez %v2100_v36  ;;  %vm2191_vm1 = vnez %v2139_v62 }
  0xdd   :  { %338 = vmax.xlane.f32.xlu1 %v317_v20  ;;  %336 = vmax.xlane.f32.xlu0 %v316_v23  ;;  %v390_v20 = vld [vmem:[%s2064_s2 + $0x70] sm:$0xff]  ;;  %v391_v23 = vld [vmem:[%s2064_s2 + $0x78] sm:$0xff] }
  0xe1   :  { %354 = vmax.xlane.f32.xlu1 %v325_v27  ;;  %352 = vmax.xlane.f32.xlu0 %v324_v35  ;;  %v1704_v27 = vpop.permute.xlu1 %547  ;;  %v1706_v35 = vpop.permute.xlu0 %550 }
  0xe5   :  { %342 = vmax.xlane.f32.xlu1 %v319_v50  ;;  %340 = vmax.xlane.f32.xlu0 %v318_v55 }
  0xe9   :  { %358 = vmax.xlane.f32.xlu1 %v327_v4  ;;  %356 = vmax.xlane.f32.xlu0 %v326_v7 }
  0xfa   :  { %553 = vperm.xlu1 %983, %v390_v20  }
  0xff   :  { %556 = vperm.xlu0 %982, %v391_v23  }
 0x156   :  { %v347_v5 = vpop.xlane.xlu1 %346  ;;  %v331_v50 = vpop.xlane.xlu0 %330 }
 0x157   :  { %v1710_v55 = vsub.f32 %v963_v33, %v347_v5  ;;  %v361_v4 = vsub.f32 %v951_v32, %v331_v50 }
 0x159   :  { %v612_v7 = vmul.f32 1.442695, %v1710_v55  ;;  %v596_v20 = vmul.f32 1.442695, %v361_v4  ;;  %v675_v23 = vsel %vm579_vm5, %v361_v4, 0.0  ;;  %vm2186_vm5 = vnez %v2107_v41 }
 0x15a   :  { %v329_v8 = vpop.xlane.xlu0 %328  ;;  %v335_v56 = vpop.xlane.xlu1 %334  ;;  %692 = vadd.xlane.f32.xlu1 %v675_v23 }
 0x15b   :  { %v360_v52 = vsub.f32 %v177_v39, %v329_v8  ;;  %v363_v33 = vsub.f32 %v954_v45, %v335_v56  ;;  %984 = vpow2.f32 %v612_v7 }
 0x15c   :  { %986 = vpow2.f32 %v596_v20 }
 0x15d   :  { %v594_v22 = vmul.f32 1.442695, %v360_v52  ;;  %v677_v60 = vsel %vm581_vm14, %v363_v33, 0.0  ;;  %v674_v15 = vsel %vm578_vm6, %v360_v52, 0.0  ;;  %v600_v34 = vmul.f32 1.442695, %v363_v33  ;;  %vm582_vm14 = vmand %vm566_vm4, %vm2187_vm15 }
 0x15e   :  { %v345_v32 = vpop.xlane.xlu0 %344  ;;  %v351_v5 = vpop.xlane.xlu1 %350  ;;  %696 = vadd.xlane.f32.xlu1 %v677_v60  ;;  %690 = vadd.xlane.f32.xlu0 %v674_v15  ;;  %vm567_vm6 = vcmp.eq.s32.totalorder %v1527_v0, %v1557_v6  ;;  %vm2189_vm4 = vnez %v2084_v24  ;;  %vm2195_vm15 = vnez %v2147_v3 }
 0x15f   :  { %v1724_v50 = vsub.f32 %v1634_v44, %v345_v32  ;;  %988 = vpow2.f32 %v594_v22  ;;  %v1730_v25 = vsub.f32 %v1640_v51, %v351_v5  ;;  %vm583_vm3 = vmand %vm567_vm6, %vm2186_vm5  ;;  %vm2190_vm6 = vnez %v2092_v30 }
 0x160   :  { %vm2193_vm5 = vnez %v2094_v31 }
 0x161   :  { %v610_v8 = vmul.f32 1.442695, %v1724_v50  ;;  %v616_v18 = vmul.f32 1.442695, %v1730_v25  ;;  %v685_v21 = vsel %vm1601_vm7, %v1730_v25, 0.0  ;;  %vm2204_vm7 = vnez %v2145_v2  ;;  %v1848_v25 = vld [vmem:[%s2067_s4 + $0x8] sm:$0xff] }
 0x162   :  { %v349_v39 = vpop.xlane.xlu0 %348  ;;  %v333_v45 = vpop.xlane.xlu1 %332 }
 0x163   :  { %990 = vpow2.f32 %v610_v8  ;;  %v1733_v52 = vsub.f32 %v1650_v61, %v349_v39  ;;  %v362_v4 = vsub.f32 %v1645_v57, %v333_v45 }
 0x164   :  { %992 = vpow2.f32 %v600_v34 }
 0x165   :  { %v598_v44 = vmul.f32 1.442695, %v362_v4  ;;  %v676_v51 = vsel %vm580_vm0, %v362_v4, 0.0  ;;  %v614_v7 = vmul.f32 1.442695, %v1733_v52  ;;  %vm2192_vm0 = vnez %v2102_v37 }
 0x166   :  { %v339_v61 = vpop.xlane.xlu1 %338  ;;  %v337_v20 = vpop.xlane.xlu0 %336  ;;  %694 = vadd.xlane.f32.xlu0 %v676_v51 }
 0x167   :  { %v365_v57 = vsub.f32 %v1652_v63, %v339_v61  ;;  %v364_v23 = vsub.f32 %v1662_v11, %v337_v20  ;;  %994 = vpow2.f32 %v598_v44 }
 0x168   :  { %v985_v28 = vpop.eup %984  ;;  %996 = vpow2.f32 %v616_v18 }
 0x169   :  { %v604_v0 = vmul.f32 1.442695, %v365_v57  ;;  %v679_v56 = vsel %vm583_vm3, %v365_v57, 0.0  ;;  %v678_v33 = vsel %vm582_vm14, %v364_v23, 0.0  ;;  %v987_v22 = vpop.eup %986  ;;  %998 = vpow2.f32 %v614_v7 }
 0x16a   :  { %v602_v63 = vmul.f32 1.442695, %v364_v23  ;;  %v355_v60 = vpop.xlane.xlu1 %354  ;;  %v353_v11 = vpop.xlane.xlu0 %352  ;;  %700 = vadd.xlane.f32.xlu1 %v679_v56  ;;  %698 = vadd.xlane.f32.xlu0 %v678_v33  ;;  %v635_v15 = vsel %vm2188_vm12, %v985_v28, 0.0  ;;  %v627_v32 = vsel %vm2189_vm4, %v987_v22, 0.0  ;;  %vm2194_vm3 = vnez %v2109_v42 }
 0x16b   :  { %v1754_v41 = vsub.f32 %v1654_v1, %v355_v60  ;;  %v1757_v40 = vsub.f32 %v1664_v12, %v353_v11  ;;  %1000 = vpow2.f32 %v604_v0  ;;  %vm2196_vm14 = vnez %v2119_v48 }
 0x16c   :  { %v989_v5 = vpop.eup %988  ;;  %1002 = vpow2.f32 %v602_v63  ;;  %vm2197_vm12 = vnez %v2111_v43  ;;  %vm2198_vm4 = vnez %v2121_v49 }
 0x16d   :  { %v620_v19 = vmul.f32 1.442695, %v1754_v41  ;;  %v618_v34 = vmul.f32 1.442695, %v1757_v40  ;;  %v626_v36 = vsel %vm2190_vm6, %v989_v5, 0.0  ;;  %vm2199_vm6 = vnez %v2134_v58  ;;  %v1863_v5 = vld [vmem:[%s2067_s4 + $0x18] sm:$0xff] }
 0x16e   :  { %660 = vadd.xlane.f32.xlu1 %v635_v15  ;;  %v343_v8 = vpop.xlane.xlu1 %342  ;;  %644 = vadd.xlane.f32.xlu0 %v627_v32  ;;  %v341_v1 = vpop.xlane.xlu0 %340  ;;  %v819_v32 = vadd.f32 1e-07, %v1848_v25 }
 0x16f   :  { %v367_v12 = vsub.f32 %v1666_v16, %v343_v8  ;;  %v366_v39 = vsub.f32 %v1680_v38, %v341_v1  ;;  %1004 = vpow2.f32 %v620_v19  ;;  %v1869_v8 = vld [vmem:[%s2067_s4 + $0x10] sm:$0xff] }
 0x170   :  { %v991_v45 = vpop.eup %990  ;;  %1006 = vpow2.f32 %v618_v34 }
 0x171   :  { %v608_v4 = vmul.f32 1.442695, %v367_v12  ;;  %v634_v24 = vsel %vm2191_vm1, %v991_v45, 0.0  ;;  %v993_v18 = vpop.eup %992  ;;  %v606_v44 = vmul.f32 1.442695, %v366_v39  ;;  %vm2200_vm1 = vnez %v2127_v53 }
 0x172   :  { %642 = vadd.xlane.f32.xlu1 %v626_v36  ;;  %v359_v51 = vpop.xlane.xlu1 %358  ;;  %658 = vadd.xlane.f32.xlu0 %v634_v24  ;;  %v357_v7 = vpop.xlane.xlu0 %356  ;;  %v629_v62 = vsel %vm2192_vm0, %v993_v18, 0.0  ;;  %vm2201_vm0 = vnez %v2129_v54  ;;  %v681_v15 = vsel %vm1578_vm10, %v367_v12, 0.0  ;;  %v680_v58 = vsel %vm1612_vm13, %v366_v39, 0.0  ;;  %v1881_v24 = vld [vmem:[%s2067_s4 + $0x20] sm:$0xff] }
 0x173   :  { %v1772_v16 = vsub.f32 %v1682_v47, %v359_v51  ;;  %v1775_v38 = vsub.f32 %v1690_v59, %v357_v7  ;;  %1008 = vpow2.f32 %v608_v4  ;;  %v683_v53 = vsel %vm1592_vm2, %v1710_v55, 0.0  ;;  %v1875_v4 = vld [vmem:[%s2067_s4 + $0x28] sm:$0xff] }
 0x174   :  { %v995_v61 = vpop.eup %994  ;;  %1010 = vpow2.f32 %v606_v44  ;;  %v682_v54 = vsel %vm1619_vm8, %v1724_v50, 0.0  ;;  %vm574_vm10 = vcmp.eq.s32.totalorder %v1704_v27, %v1557_v6  ;;  %vm2203_vm8 = vnez %v2114_v46  ;;  %v2205_v27 = vld [vmem:[#allocation2_spill] sm:$0xff] }
 0x175   :  { %v624_v30 = vmul.f32 1.442695, %v1772_v16  ;;  %v997_v20 = vpop.eup %996  ;;  %v622_v57 = vmul.f32 1.442695, %v1775_v38  ;;  %v628_v23 = vsel %vm2193_vm5, %v995_v61, 0.0 }
 0x176   :  { %648 = vadd.xlane.f32.xlu1 %v629_v62  ;;  %v999_v47 = vpop.eup %998  ;;  %646 = vadd.xlane.f32.xlu0 %v628_v23  ;;  %v637_v59 = vsel %vm2194_vm3, %v997_v20, 0.0  ;;  %v554_v10 = vpop.permute.xlu1 %553  ;;  %vm590_vm3 = vmand %vm574_vm10, %vm2204_vm7  ;;  %v821_v45 = vadd.f32 1e-07, %v1863_v5  ;;  %v820_v36 = vadd.f32 1e-07, %v1869_v8  ;;  %v1899_v62 = vld [vmem:[%s2067_s4 + $0x58] sm:$0xff] }
 0x177   :  { %1012 = vpow2.f32 %v624_v30  ;;  %v636_v37 = vsel %vm2195_vm15, %v999_v47, 0.0  ;;  %vm576_vm13 = vcmp.eq.s32.totalorder %v554_v10, %v1557_v6  ;;  %v686_v17 = vsel %vm590_vm3, %v1757_v40, 0.0  ;;  %v1857_v40 = vld [vmem:[%s2067_s4] sm:$0xff] }
 0x178   :  { %v1001_v28 = vpop.eup %1000  ;;  %1014 = vpow2.f32 %v622_v57  ;;  %vm2206_vm15 = vnez %v2205_v27  ;;  %v818_v34 = vadd.f32 1e-07, %v1857_v40  ;;  %v823_v51 = vadd.f32 1e-07, %v1875_v4  ;;  %v1894_v30 = vld [vmem:[%s2067_s4 + $0x40] sm:$0xff] }
 0x179   :  { %v1003_v0 = vpop.eup %1002  ;;  %v631_v56 = vsel %vm2196_vm14, %v1001_v28, 0.0  ;;  %1016 = vrcp.f32 %v819_v32  ;;  %v826_v47 = vadd.f32 1e-07, %v1894_v30  ;;  %v829_v28 = vadd.f32 1e-07, %v1899_v62 }
 0x17a   :  { %664 = vadd.xlane.f32.xlu1 %v637_v59  ;;  %662 = vadd.xlane.f32.xlu0 %v636_v37  ;;  %v630_v31 = vsel %vm2197_vm12, %v1003_v0, 0.0  ;;  %v557_v13 = vpop.permute.xlu0 %556  ;;  %1018 = vrcp.f32 %v818_v34 }
 0x17b   :  { %vm577_vm2 = vcmp.eq.s32.totalorder %v557_v13, %v1557_v6  ;;  %v1922_v13 = vld [vmem:[%s2067_s4 + $0x30] sm:$0xff] }
 0x17c   :  { %v1005_v33 = vpop.eup %1004  ;;  %vm593_vm14 = vmand %vm577_vm2, %vm2206_vm15 }
 0x17d   :  { %v1007_v22 = vpop.eup %1006  ;;  %v639_v42 = vsel %vm2198_vm4, %v1005_v33, 0.0 }
 0x17e   :  { %652 = vadd.xlane.f32.xlu1 %v631_v56  ;;  %650 = vadd.xlane.f32.xlu0 %v630_v31  ;;  %v638_v3 = vsel %vm1572_vm11, %v1007_v22, 0.0  ;;  %vm2202_vm11 = vnez %v2167_v29  ;;  %v2207_v29 = vld [vmem:[#allocation3_spill] sm:$0xff] }
 0x17f   :  { %v684_v14 = vsel %vm2202_vm11, %v1733_v52, 0.0  ;;  %vm2208_vm12 = vnez %v2207_v29 }
 0x180   :  { %v1009_v63 = vpop.eup %1008  ;;  %vm592_vm4 = vmand %vm576_vm13, %vm2208_vm12 }
 0x181   :  { %v1011_v60 = vpop.eup %1010  ;;  %v633_v48 = vsel %vm2199_vm6, %v1009_v63, 0.0  ;;  %v688_v46 = vsel %vm592_vm4, %v1775_v38, 0.0  ;;  %v1888_v38 = vld [vmem:[%s2067_s4 + $0x48] sm:$0xff]  ;;  %vm882_vm6 = vcmask 7168  }
 0x182   :  { %668 = vadd.xlane.f32.xlu1 %v639_v42  ;;  %666 = vadd.xlane.f32.xlu0 %v638_v3  ;;  %v632_v43 = vsel %vm2200_vm1, %v1011_v60, 0.0  ;;  %v827_v61 = vadd.f32 1e-07, %v1888_v38  ;;  %v1906_v42 = vld [vmem:[%s2067_s4 + $0x50] sm:$0xff]  ;;  %v1911_v3 = vld [vmem:[%s2067_s4 + $0x38] sm:$0xff] }
 0x184   :  { %v1013_v11 = vpop.eup %1012 }
 0x185   :  { %v1015_v19 = vpop.eup %1014  ;;  %v641_v49 = vsel %vm2201_vm0, %v1013_v11, 0.0 }
 0x186   :  { %656 = vadd.xlane.f32.xlu1 %v633_v48  ;;  %654 = vadd.xlane.f32.xlu0 %v632_v43  ;;  %v640_v9 = vsel %vm1586_vm9, %v1015_v19, 0.0  ;;  %vm575_vm9 = vcmp.eq.s32.totalorder %v1706_v35, %v1557_v6  ;;  %v689_v6 = vsel %vm593_vm14, %v1772_v16, 0.0  ;;  %v822_v16 = vadd.f32 1e-07, %v1881_v24  ;;  %v1017_v63 = vpop.eup %1016 }
 0x187   :  { %vm591_vm5 = vmand %vm575_vm9, %vm2203_vm8  ;;  %v1019_v60 = vpop.eup %1018 }
 0x188   :  { %v687_v26 = vsel %vm591_vm5, %v1754_v41, 0.0 }
 0x18a   :  { %672 = vadd.xlane.f32.xlu1 %v641_v49  ;;  %670 = vadd.xlane.f32.xlu0 %v640_v9  ;;  %v828_v49 = vadd.f32 1e-07, %v1906_v42 }
 0x18e   :  { %704 = vadd.xlane.f32.xlu1 %v681_v15  ;;  %702 = vadd.xlane.f32.xlu0 %v680_v58 }
 0x192   :  { %708 = vadd.xlane.f32.xlu1 %v683_v53  ;;  %706 = vadd.xlane.f32.xlu0 %v682_v54  ;;  %v825_v53 = vadd.f32 1e-07, %v1911_v3 }
 0x196   :  { %712 = vadd.xlane.f32.xlu1 %v685_v21  ;;  %710 = vadd.xlane.f32.xlu0 %v684_v14 }
 0x19a   :  { %716 = vadd.xlane.f32.xlu1 %v687_v26  ;;  %714 = vadd.xlane.f32.xlu0 %v686_v17 }
 0x19e   :  { %720 = vadd.xlane.f32.xlu1 %v689_v6  ;;  %718 = vadd.xlane.f32.xlu0 %v688_v46  ;;  %v1930_v6 = vld [vmem:[%s2067_s4 + $0x68] sm:$0xff] }
 0x1e3   :  { %v1837_v35 = vpop.xlane.xlu1 %692 }
 0x1e7   :  { %v1839_v2 = vpop.xlane.xlu0 %690  ;;  %v1841_v55 = vpop.xlane.xlu1 %696 }
 0x1ef   :  { %v1843_v50 = vpop.xlane.xlu0 %694 }
 0x1f3   :  { %v1850_v52 = vpop.xlane.xlu1 %700  ;;  %v1852_v41 = vpop.xlane.xlu0 %698 }
 0x1f7   :  { %v661_v1 = vpop.xlane.xlu1 %660  ;;  %v645_v12 = vpop.xlane.xlu0 %644 }
 0x1f8   :  { %v723_v39 = vadd.f32 1e-07, %v645_v12  ;;  %v731_v37 = vadd.f32 1e-07, %v661_v1  ;;  %v1939_v1 = vld [vmem:[%s2067_s4 + $0x60] sm:$0xff] }
 0x1fa   :  { %1020 = vlog2.f32 %v723_v39 }
 0x1fb   :  { %v643_v18 = vpop.xlane.xlu1 %642  ;;  %v659_v44 = vpop.xlane.xlu0 %658  ;;  %1022 = vrcp.f32 %v821_v45 }
 0x1fc   :  { %v722_v7 = vadd.f32 1e-07, %v643_v18  ;;  %1024 = vrcp.f32 %v820_v36  ;;  %v730_v0 = vadd.f32 1e-07, %v659_v44 }
 0x1fe   :  { %1026 = vlog2.f32 %v722_v7 }
 0x1ff   :  { %v649_v20 = vpop.xlane.xlu1 %648  ;;  %1028 = vrcp.f32 %v823_v51  ;;  %v647_v23 = vpop.xlane.xlu0 %646 }
 0x200   :  { %v725_v57 = vadd.f32 1e-07, %v649_v20  ;;  %1030 = vrcp.f32 %v822_v16  ;;  %v724_v59 = vadd.f32 1e-07, %v647_v23  ;;  %v830_v20 = vadd.f32 1e-07, %v1939_v1 }
 0x201   :  { %1032 = vrcp.f32 %v827_v61 }
 0x202   :  { %1034 = vlog2.f32 %v725_v57 }
 0x203   :  { %1036 = vlog2.f32 %v724_v59  ;;  %v665_v56 = vpop.xlane.xlu1 %664  ;;  %v663_v31 = vpop.xlane.xlu0 %662 }
 0x204   :  { %v733_v33 = vadd.f32 1e-07, %v665_v56  ;;  %1038 = vrcp.f32 %v826_v47  ;;  %v732_v22 = vadd.f32 1e-07, %v663_v31 }
 0x205   :  { %1040 = vrcp.f32 %v829_v28 }
 0x206   :  { %1042 = vlog2.f32 %v731_v37 }
 0x207   :  { %1044 = vlog2.f32 %v730_v0  ;;  %v653_v48 = vpop.xlane.xlu1 %652  ;;  %v1021_v11 = vpop.eup %1020 }
 0x208   :  { %1046 = vlog2.f32 %v733_v33  ;;  %v727_v43 = vadd.f32 1e-07, %v653_v48  ;;  %v651_v19 = vpop.xlane.xlu0 %650  ;;  %v1914_v9 = vpop.eup %1022  ;;  %v741_v15 = vmul.f32 0.6931472, %v1021_v11  ;;  %v1960_v33 = vld [vmem:[%s2067_s4 + $0x78] sm:$0xff]  ;;  %v1966_v48 = vld [vmem:[%s2067_s4 + $0x70] sm:$0xff] }
 0x209   :  { %1048 = vlog2.f32 %v732_v22  ;;  %v726_v58 = vadd.f32 1e-07, %v651_v19  ;;  %v1917_v54 = vpop.eup %1024 }
 0x20a   :  { %1050 = vlog2.f32 %v727_v43  ;;  %v787_v21 = vmul.f32 %v1848_v25, %v741_v15  ;;  %v824_v25 = vadd.f32 1e-07, %v1922_v13  ;;  %v833_v15 = vadd.f32 1e-07, %v1960_v33 }
 0x20b   :  { %v1027_v10 = vpop.eup %1026  ;;  %1052 = vlog2.f32 %v726_v58  ;;  %v669_v14 = vpop.xlane.xlu1 %668 }
 0x20c   :  { %v1925_v26 = vpop.eup %1028  ;;  %v739_v17 = vmul.f32 0.6931472, %v1027_v10  ;;  %v735_v27 = vadd.f32 1e-07, %v669_v14  ;;  %v667_v29 = vpop.xlane.xlu0 %666  ;;  %1054 = vrcp.f32 %v828_v49  ;;  %v803_v32 = vsub.f32 %v1837_v35, %v787_v21 }
 0x20d   :  { %v1932_v46 = vpop.eup %1030  ;;  %v734_v34 = vadd.f32 1e-07, %v667_v29  ;;  %1056 = vrcp.f32 %v825_v53  ;;  %v831_v35 = vadd.f32 1e-07, %v1930_v6  ;;  %v832_v21 = vadd.f32 1e-07, %v1966_v48 }
 0x20e   :  { %v1941_v12 = vpop.eup %1032  ;;  %v786_v39 = vmul.f32 %v1857_v40, %v739_v17  ;;  %1058 = vlog2.f32 %v735_v27  ;;  %v837_v36 = vmul.f32 %v1017_v63, %v803_v32 }
 0x20f   :  { %v1035_v45 = vpop.eup %1034  ;;  %1060 = vlog2.f32 %v734_v34  ;;  %v657_v18 = vpop.xlane.xlu1 %656 }
 0x210   :  { %v1037_v44 = vpop.eup %1036  ;;  %v802_v51 = vsub.f32 %v1839_v2, %v786_v39  ;;  %v745_v7 = vmul.f32 0.6931472, %v1035_v45  ;;  %v729_v16 = vadd.f32 1e-07, %v657_v18  ;;  %v655_v61 = vpop.xlane.xlu0 %654  ;;  %v867_v23 = vmul.f32 -1.0, %v837_v36 }
 0x211   :  { %v1947_v57 = vpop.eup %1038  ;;  %v743_v40 = vmul.f32 0.6931472, %v1037_v44  ;;  %v728_v47 = vadd.f32 1e-07, %v655_v61  ;;  %1062 = vrcp.f32 %v824_v25 }
 0x212   :  { %v1949_v59 = vpop.eup %1040  ;;  %v835_v28 = vmul.f32 %v1019_v60, %v802_v51  ;;  %v789_v37 = vmul.f32 %v1863_v5, %v745_v7  ;;  %1064 = vlog2.f32 %v729_v16  ;;  %884 = vst.msk [vmem:[%s2068_s7 + $0x8] sm:$0xff] %vm882_vm6, %v867_v23 }
 0x213   :  { %v1043_v0 = vpop.eup %1042  ;;  %v788_v2 = vmul.f32 %v1869_v8, %v743_v40  ;;  %1066 = vlog2.f32 %v728_v47  ;;  %v673_v56 = vpop.xlane.xlu1 %672 }
 0x214   :  { %v1045_v31 = vpop.eup %1044  ;;  %v866_v22 = vmul.f32 -1.0, %v835_v28  ;;  %v805_v5 = vsub.f32 %v1841_v55, %v789_v37  ;;  %v737_v63 = vadd.f32 1e-07, %v673_v56  ;;  %v671_v60 = vpop.xlane.xlu0 %670  ;;  %1068 = vrcp.f32 %v831_v35 }
 0x215   :  { %v1047_v8 = vpop.eup %1046  ;;  %v804_v11 = vsub.f32 %v1843_v50, %v788_v2  ;;  %v736_v43 = vadd.f32 1e-07, %v671_v60  ;;  %1070 = vrcp.f32 %v830_v20  ;;  %v757_v49 = vmul.f32 0.6931472, %v1043_v0 }
 0x216   :  { %v1049_v19 = vpop.eup %1048  ;;  %883 = vst.msk [vmem:[%s2068_s7] sm:$0xff] %vm882_vm6, %v866_v22  ;;  %v841_v55 = vmul.f32 %v1914_v9, %v805_v5  ;;  %1072 = vlog2.f32 %v737_v63  ;;  %v755_v50 = vmul.f32 0.6931472, %v1045_v31  ;;  %v761_v45 = vmul.f32 0.6931472, %v1047_v8 }
 0x217   :  { %v1051_v58 = vpop.eup %1050  ;;  %v839_v53 = vmul.f32 %v1917_v54, %v804_v11  ;;  %1074 = vlog2.f32 %v736_v43  ;;  %v1976_v10 = vpop.xlane.xlu1 %704  ;;  %v795_v39 = vmul.f32 %v1888_v38, %v757_v49  ;;  %v759_v51 = vmul.f32 0.6931472, %v1049_v19 }
 0x218   :  { %v1053_v14 = vpop.eup %1052  ;;  %v869_v17 = vmul.f32 -1.0, %v841_v55  ;;  %v749_v27 = vmul.f32 0.6931472, %v1051_v58  ;;  %v1979_v29 = vpop.xlane.xlu0 %702  ;;  %1076 = vrcp.f32 %v833_v15  ;;  %v794_v44 = vmul.f32 %v1894_v30, %v755_v50 }
 0x219   :  { %v1055_v32 = vpop.eup %1054  ;;  %v868_v9 = vmul.f32 -1.0, %v839_v53  ;;  %v747_v34 = vmul.f32 0.6931472, %v1053_v14  ;;  %1078 = vrcp.f32 %v832_v21 }
 0x21a   :  { %v1981_v25 = vpop.eup %1056  ;;  %886 = vst.msk [vmem:[%s2068_s7 + $0x18] sm:$0xff] %vm882_vm6, %v869_v17  ;;  %v791_v54 = vmul.f32 %v1875_v4, %v749_v27 }
 0x21b   :  { %v1059_v36 = vpop.eup %1058  ;;  %885 = vst.msk [vmem:[%s2068_s7 + $0x10] sm:$0xff] %vm882_vm6, %v868_v9  ;;  %v790_v18 = vmul.f32 %v1881_v24, %v747_v34  ;;  %v709_v35 = vpop.xlane.xlu1 %708  ;;  %v797_v24 = vmul.f32 %v1899_v62, %v761_v45 }
 0x21c   :  { %v1061_v7 = vpop.eup %1060  ;;  %v807_v4 = vsub.f32 %v1850_v52, %v791_v54  ;;  %v811_v16 = vsub.f32 %v709_v35, %v795_v39  ;;  %v707_v38 = vpop.xlane.xlu0 %706  ;;  %v765_v28 = vmul.f32 0.6931472, %v1059_v36  ;;  %v796_v52 = vmul.f32 %v1906_v42, %v759_v51 }
 0x21d   :  { %v806_v61 = vsub.f32 %v1852_v41, %v790_v18  ;;  %v810_v20 = vsub.f32 %v707_v38, %v794_v44  ;;  %v763_v56 = vmul.f32 0.6931472, %v1061_v7 }
 0x21e   :  { %v1063_v23 = vpop.eup %1062  ;;  %v845_v40 = vmul.f32 %v1925_v26, %v807_v4  ;;  %v853_v47 = vmul.f32 %v1941_v12, %v811_v16 }
 0x21f   :  { %v1065_v37 = vpop.eup %1064  ;;  %v843_v30 = vmul.f32 %v1932_v46, %v806_v61  ;;  %v851_v0 = vmul.f32 %v1947_v57, %v810_v20  ;;  %v713_v2 = vpop.xlane.xlu1 %712  ;;  %v799_v57 = vmul.f32 %v1930_v6, %v765_v28  ;;  %v798_v15 = vmul.f32 %v1939_v1, %v763_v56 }
 0x220   :  { %v1067_v31 = vpop.eup %1066  ;;  %v871_v41 = vmul.f32 -1.0, %v845_v40  ;;  %v753_v22 = vmul.f32 0.6931472, %v1065_v37  ;;  %v875_v5 = vmul.f32 -1.0, %v853_v47  ;;  %v813_v63 = vsub.f32 %v713_v2, %v797_v24  ;;  %v711_v26 = vpop.xlane.xlu0 %710 }
 0x221   :  { %v1069_v60 = vpop.eup %1068  ;;  %v870_v12 = vmul.f32 -1.0, %v843_v30  ;;  %v751_v8 = vmul.f32 0.6931472, %v1067_v31  ;;  %v874_v62 = vmul.f32 -1.0, %v851_v0  ;;  %v812_v11 = vsub.f32 %v711_v26, %v796_v52 }
 0x222   :  { %v1071_v43 = vpop.eup %1070  ;;  %888 = vst.msk [vmem:[%s2068_s7 + $0x28] sm:$0xff] %vm882_vm6, %v871_v41  ;;  %v793_v42 = vmul.f32 %v1911_v3, %v753_v22  ;;  %892 = vst.msk [vmem:[%s2068_s7 + $0x48] sm:$0xff] %vm882_vm6, %v875_v5  ;;  %v857_v46 = vmul.f32 %v1949_v59, %v813_v63 }
 0x223   :  { %v1073_v19 = vpop.eup %1072  ;;  %887 = vst.msk [vmem:[%s2068_s7 + $0x20] sm:$0xff] %vm882_vm6, %v870_v12  ;;  %v792_v55 = vmul.f32 %v1922_v13, %v751_v8  ;;  %891 = vst.msk [vmem:[%s2068_s7 + $0x40] sm:$0xff] %vm882_vm6, %v874_v62  ;;  %v855_v3 = vmul.f32 %v1055_v32, %v812_v11  ;;  %v717_v49 = vpop.xlane.xlu1 %716 }
 0x224   :  { %v1075_v59 = vpop.eup %1074  ;;  %v809_v6 = vsub.f32 %v1976_v10, %v793_v42  ;;  %v877_v58 = vmul.f32 -1.0, %v857_v46  ;;  %v815_v53 = vsub.f32 %v717_v49, %v799_v57  ;;  %v715_v50 = vpop.xlane.xlu0 %714  ;;  %v769_v21 = vmul.f32 0.6931472, %v1073_v19 }
 0x225   :  { %v808_v14 = vsub.f32 %v1979_v29, %v792_v55  ;;  %v876_v17 = vmul.f32 -1.0, %v855_v3  ;;  %v814_v13 = vsub.f32 %v715_v50, %v798_v15  ;;  %v767_v27 = vmul.f32 0.6931472, %v1075_v59  ;;  %v1077_v10 = vpop.eup %1076 }
 0x226   :  { %v849_v9 = vmul.f32 %v1981_v25, %v809_v6  ;;  %894 = vst.msk [vmem:[%s2068_s7 + $0x58] sm:$0xff] %vm882_vm6, %v877_v58  ;;  %v861_v1 = vmul.f32 %v1069_v60, %v815_v53  ;;  %v801_v32 = vmul.f32 %v1960_v33, %v769_v21  ;;  %v1079_v25 = vpop.eup %1078 }
 0x227   :  { %v847_v34 = vmul.f32 %v1063_v23, %v808_v14  ;;  %893 = vst.msk [vmem:[%s2068_s7 + $0x50] sm:$0xff] %vm882_vm6, %v876_v17  ;;  %v859_v29 = vmul.f32 %v1071_v43, %v814_v13  ;;  %v721_v54 = vpop.xlane.xlu1 %720  ;;  %v800_v39 = vmul.f32 %v1966_v48, %v767_v27 }
 0x228   :  { %v873_v45 = vmul.f32 -1.0, %v849_v9  ;;  %v879_v36 = vmul.f32 -1.0, %v861_v1  ;;  %v817_v18 = vsub.f32 %v721_v54, %v801_v32  ;;  %v719_v35 = vpop.xlane.xlu0 %718 }
 0x229   :  { %v872_v44 = vmul.f32 -1.0, %v847_v34  ;;  %v878_v51 = vmul.f32 -1.0, %v859_v29  ;;  %v816_v7 = vsub.f32 %v719_v35, %v800_v39 }
 0x22a   :  { %890 = vst.msk [vmem:[%s2068_s7 + $0x38] sm:$0xff] %vm882_vm6, %v873_v45  ;;  %896 = vst.msk [vmem:[%s2068_s7 + $0x68] sm:$0xff] %vm882_vm6, %v879_v36  ;;  %v865_v33 = vmul.f32 %v1077_v10, %v817_v18 }
 0x22b   :  { %889 = vst.msk [vmem:[%s2068_s7 + $0x30] sm:$0xff] %vm882_vm6, %v872_v44  ;;  %895 = vst.msk [vmem:[%s2068_s7 + $0x60] sm:$0xff] %vm882_vm6, %v878_v51  ;;  %v863_v48 = vmul.f32 %v1079_v25, %v816_v7 }
 0x22c   :  { %v881_v4 = vmul.f32 -1.0, %v865_v33 }
 0x22d   :  { %v880_v16 = vmul.f32 -1.0, %v863_v48 }
 0x22e   :  { %898 = vst.msk [vmem:[%s2068_s7 + $0x78] sm:$0xff] %vm882_vm6, %v881_v4 }
 0x22f   :  { %897 = vst.msk [vmem:[%s2068_s7 + $0x70] sm:$0xff] %vm882_vm6, %v880_v16 }

</bundles_post_ra>
